<compile_context>
chip_gen: v5e
topology: v5e:2x2
jax: 0.10.0
libtpu: 0.0.40
codegen_flags: <defaults>
</compile_context>

<pallas_src>
import functools
import math

import numpy as np
import jax
import jax.numpy as jnp
from jax import lax
from jax.experimental import pallas as pl
from jax.experimental.pallas import tpu as pltpu


GROUP = 8  # harmonics per sublane block (one 8-row vreg slab)


def _round_up(x, m):
    return ((x + m - 1) // m) * m


# ----------------------------------------------------------------------------
# Pallas kernel: one (time-tile, batch) block does
#   * a single MXU matmul upsampling ALL stacked frame-rate controls from the
#     local frame window to audio rate
#   * a grouped (8 harmonics at a time) sin/cos bank: 8 EUP sin+cos rows, then
#     VPU angle-addition rotation per group -> full sublane occupancy
#   * Nyquist masking against a precomputed per-sample cutoff index
#   * noise modulation and component mixing (normalization hoisted out)
# ----------------------------------------------------------------------------
def ddsp_kernel(ctrl_ref, w_ref, phase_ref, noise_ref, trans_ref, out_ref, *,
                sample_rate, k8):
    ctrl = ctrl_ref[0, 0]                       # (C_pad, F_loc) frame-rate controls
    W = w_ref[0]                                # (F_loc, TILE_T) local interp matrix

    # One fused MXU matmul upsamples every control row to audio rate.
    up = jnp.dot(ctrl, W, preferred_element_type=jnp.float32)   # (C_pad, TILE_T)
    tile_t = up.shape[1]

    # Row layout (wrapper-side): 0 f0 | 1 sum(noise mags) | 2..4 component
    # gains | 5..7 zero pad | 8..8+k8-1 A_k | 8+k8..8+2*k8-1 B_k  (8-aligned).
    f0_up = up[0:1]                             # (1, T)
    nmag_up = up[1:2]
    g_h, g_n, g_t = up[2:3], up[3:4], up[4:5]

    phase = phase_ref[0]                        # (1, T) wrapped phase in cycles [0,1)

    # Base bank of GROUP harmonics (k = 1..GROUP) -> (8, T), full vreg occupancy.
    krow = (lax.broadcasted_iota(jnp.int32, (GROUP, tile_t), 0) + 1
            ).astype(jnp.float32)
    kphi = krow * phase
    ang = (2.0 * math.pi) * (kphi - jnp.floor(kphi))
    s = jnp.sin(ang)
    c = jnp.cos(ang)
    # Rotation by GROUP harmonics uses sin/cos(GROUP*theta) = last bank row.
    s_g = jnp.broadcast_to(s[GROUP - 1:GROUP], (GROUP, tile_t))   # hoisted bcast
    c_g = jnp.broadcast_to(c[GROUP - 1:GROUP], (GROUP, tile_t))

    # Nyquist cutoff as a harmonic index: mask k >= k_cut (one divide/sample).
    k_cut = jnp.broadcast_to(0.5 * sample_rate / jnp.maximum(f0_up, 1e-6),
                             (GROUP, tile_t))

    acc = jnp.zeros((GROUP, tile_t), jnp.float32)
    n_groups = k8 // GROUP
    a_base = 8
    b_base = 8 + k8
    for g in range(n_groups):                   # static unroll; n_groups is small
        a = up[a_base + g * GROUP:a_base + (g + 1) * GROUP]       # (8, T) aligned
        b = up[b_base + g * GROUP:b_base + (g + 1) * GROUP]       # (8, T) aligned
        contrib = a * s + b * c                 # amp*sin(k*theta + phase_k)
        acc = acc + jnp.where(krow + float(g * GROUP) < k_cut, contrib, 0.0)
        if g + 1 < n_groups:
            # sin/cos((k+GROUP)*theta) via angle addition (VPU only).
            s, c = s * c_g + c * s_g, c * c_g - s * s_g
    harm = jnp.sum(acc, axis=0, keepdims=True)                    # (1, T)

    # Filtered noise: wrapper-supplied white noise modulated by the summed
    # band magnitudes (TODO(synk): per-band FIR filtering not implemented —
    # FilteredNoiseGenerator definition was not provided).
    noise_sig = noise_ref[0] * nmag_up

    sig = harm * g_h + noise_sig * g_n + trans_ref[0] * g_t
    out_ref[0] = sig


# ----------------------------------------------------------------------------
# Wrapper: control stacking, local interpolation windows, phase cumsum,
# noise / transient generation, final per-batch normalization.
# ----------------------------------------------------------------------------
def ddsp_synthesize(f0, harmonic_amplitudes, harmonic_phase=None,
                    noise_magnitudes=None, transient_timings=None,
                    transient_ids=None, transient_gains=None,
                    component_gains=None, *, sample_rate=16000,
                    n_transient_templates=4, noise_seed=0):
    f0 = jnp.asarray(f0, jnp.float32)
    amps = jnp.asarray(harmonic_amplitudes, jnp.float32)
    B, n_frames = f0.shape
    K = amps.shape[1]
    T = int(n_frames * sample_rate / 100)       # audio_length (reference formula)

    # ---- time tiling: pad T to a multiple of TILE_T, trim at the end -------
    TILE_T = min(2048, _round_up(T, 128))       # tune per chip (v6e can go 4096)
    n_t = -(-T // TILE_T)
    TP = n_t * TILE_T

    # ---- static interpolation geometry (numpy: data-independent, no HBM) ---
    # Linear, align_corners=True, matching F.interpolate(..., 'linear', True).
    t_idx = np.minimum(np.arange(TP), T - 1).astype(np.float64)
    src = t_idx * (n_frames - 1) / max(T - 1, 1)
    lo = np.minimum(np.floor(src).astype(np.int64), n_frames - 1)
    hi = np.minimum(lo + 1, n_frames - 1)
    frac = (src - lo).astype(np.float32)

    lo_t = lo.reshape(n_t, TILE_T)
    hi_t = hi.reshape(n_t, TILE_T)
    frac_t = frac.reshape(n_t, TILE_T)
    start = lo_t.min(axis=1)                                     # (n_t,)
    need = int((hi_t.max(axis=1) - start + 1).max())
    F_loc = min(_round_up(max(need, 1), 8), n_frames)            # local window size
    start = np.minimum(start, n_frames - F_loc)

    f_ax = np.arange(F_loc)[None, :, None]
    lo_rel = (lo_t - start[:, None])[:, None, :]
    hi_rel = (hi_t - start[:, None])[:, None, :]
    fr = frac_t[:, None, :]
    W_local = ((lo_rel == f_ax) * (1.0 - fr)
               + (hi_rel == f_ax) * fr).astype(np.float32)       # (n_t, F_loc, TILE_T)
    win_idx = (start[:, None] + np.arange(F_loc)[None, :]).astype(np.int32)

    # ---- frame-rate control stack (rows padded for 8-aligned group slices) --
    if harmonic_phase is None:
        harmonic_phase = jnp.zeros((B, K), jnp.float32)
    ph = jnp.asarray(harmonic_phase, jnp.float32)
    A = amps * jnp.cos(ph)[:, :, None]                           # (B, K, n_frames)
    Bc = amps * jnp.sin(ph)[:, :, None]
    K8 = _round_up(max(K, GROUP), GROUP)
    if K8 > K:
        A = jnp.pad(A, ((0, 0), (0, K8 - K), (0, 0)))
        Bc = jnp.pad(Bc, ((0, 0), (0, K8 - K), (0, 0)))

    if noise_magnitudes is not None:
        nmag_sum = jnp.asarray(noise_magnitudes, jnp.float32).sum(axis=1,
                                                                  keepdims=True)
    else:
        nmag_sum = jnp.zeros((B, 1, n_frames), jnp.float32)

    if component_gains is None:
        component_gains = jnp.concatenate(
            [jnp.full((B, 1, n_frames), 0.7, jnp.float32),
             jnp.full((B, 1, n_frames), 0.2, jnp.float32),
             jnp.full((B, 1, n_frames), 0.1, jnp.float32)], axis=1)
    gains = jnp.asarray(component_gains, jnp.float32)

    misc = jnp.concatenate([f0[:, None, :], nmag_sum, gains,
                            jnp.zeros((B, 3, n_frames), jnp.float32)], axis=1)
    ctrl = jnp.concatenate([misc, A, Bc], axis=1)                # (B, 8+2*K8, nf)
    C_pad = ctrl.shape[1]

    # Per-tile local control windows (tiny: B * n_t * C_pad * F_loc floats).
    ctrl_win = jnp.take(ctrl, jnp.asarray(win_idx), axis=2)      # (B, C, n_t, F_loc)
    ctrl_win = jnp.transpose(ctrl_win, (0, 2, 1, 3))             # (B, n_t, C, F_loc)

    # ---- audio-rate wrapper inputs ------------------------------------------
    # f0 upsample via gather + lerp (no dense one_hot / W products).
    lo_T = jnp.asarray(lo[:T])
    hi_T = jnp.asarray(hi[:T])
    frac_T = jnp.asarray(frac[:T])
    f0_up = (jnp.take(f0, lo_T, axis=1) * (1.0 - frac_T)
             + jnp.take(f0, hi_T, axis=1) * frac_T)              # (B, T)

    # Two-level wrapped phase cumsum (bounds f32 drift: top level stays < n_t).
    inc = jnp.pad(f0_up / float(sample_rate), ((0, 0), (0, TP - T)))
    inc = inc.reshape(B, n_t, TILE_T)
    local = jnp.cumsum(inc, axis=-1)
    tile_tot = jnp.mod(local[:, :, -1], 1.0)
    prefix = jnp.mod(jnp.cumsum(tile_tot, axis=1) - tile_tot, 1.0)
    phase = jnp.mod(local + prefix[:, :, None], 1.0).reshape(B, 1, TP)

    # White noise excitation (deterministic, tiling-independent).
    noise = jax.random.uniform(jax.random.PRNGKey(noise_seed), (B, T),
                               minval=-1.0, maxval=1.0, dtype=jnp.float32)
    noise = jnp.pad(noise, ((0, 0), (0, TP - T)))[:, None, :]

    # Transient signal: L-sample decaying-sinusoid templates scatter-added at
    # timing * audio_length.  TODO(synk): TransientGenerator definition not
    # provided; canonical template placement is used.
    if (transient_timings is not None and transient_ids is not None
            and transient_gains is not None):
        L = 16
        tt = jnp.arange(L, dtype=jnp.float32) / L
        templates = (jnp.exp(-4.0 * tt)[None, :]
                     * jnp.sin(2.0 * math.pi
                               * (jnp.arange(n_transient_templates,
                                             dtype=jnp.float32)[:, None] + 1.0)
                               * tt[None, :]))                    # (n_tmpl, L)
        pos = jnp.round(jnp.clip(jnp.asarray(transient_timings, jnp.float32),
                                 0.0, 1.0) * (T - 1)).astype(jnp.int32)
        ids = jnp.clip(jnp.asarray(transient_ids, jnp.int32),
                       0, n_transient_templates - 1)
        tg = jnp.asarray(transient_gains, jnp.float32)
        idx = pos[:, :, None] + jnp.arange(L, dtype=jnp.int32)[None, None, :]
        vals = templates[ids] * tg[:, :, None]                   # (B, M, L)
        b_idx = jnp.broadcast_to(jnp.arange(B, dtype=jnp.int32)[:, None, None],
                                 idx.shape)
        trans = jnp.zeros((B, T + L), jnp.float32).at[b_idx, idx].add(vals)[:, :T]
    else:
        trans = jnp.zeros((B, T), jnp.float32)
    trans = jnp.pad(trans, ((0, 0), (0, TP - T)))[:, None, :]

    kernel = functools.partial(ddsp_kernel, sample_rate=float(sample_rate),
                               k8=K8)

    # Grid (n_t, B): W_local block index depends only on the outer axis, so it
    # stays resident across the inner batch loop; both axes are parallel.
    out = pl.pallas_call(
        kernel,
        out_shape=jax.ShapeDtypeStruct((B, 1, TP), jnp.float32),
        grid=(n_t, B),
        in_specs=[
            pl.BlockSpec((1, 1, C_pad, F_loc), lambda t, b: (b, t, 0, 0)),
            pl.BlockSpec((1, F_loc, TILE_T), lambda t, b: (t, 0, 0)),
            pl.BlockSpec((1, 1, TILE_T), lambda t, b: (b, 0, t)),
            pl.BlockSpec((1, 1, TILE_T), lambda t, b: (b, 0, t)),
            pl.BlockSpec((1, 1, TILE_T), lambda t, b: (b, 0, t)),
        ],
        out_specs=pl.BlockSpec((1, 1, TILE_T), lambda t, b: (b, 0, t)),
        compiler_params=pltpu.CompilerParams(
            dimension_semantics=("parallel", "parallel")),
    )(ctrl_win, jnp.asarray(W_local), phase, noise, trans)

    audio = out[:, 0, :T]                                        # trim padding
    # Per-batch max-abs normalization (hoisted out of the kernel so the time
    # axis stays fully parallel), matching the reference forward().
    peak = jnp.max(jnp.abs(audio), axis=1, keepdims=True)
    return audio / jnp.maximum(peak, 1e-8)


if __name__ == "__main__":
    # Small shapes: batch=2, n_frames=8, sample_rate=1600 -> audio_length=128,
    # n_harmonics=16, n_noise_bands=8, max_transients=4.
    B, n_frames, SR = 2, 8, 1600
    K, NB, M = 16, 8, 4

    key = jax.random.PRNGKey(0)
    k1, k2, k3, k4, k5, k6, k7 = jax.random.split(key, 7)

    f0 = 100.0 + 50.0 * jax.random.uniform(k1, (B, n_frames))               # Hz
    harmonic_amplitudes = jax.nn.softplus(
        jax.random.normal(k2, (B, K, n_frames))) * 0.1
    harmonic_phase = jax.random.uniform(k3, (B, K)) * 2.0 * math.pi
    noise_magnitudes = jax.nn.sigmoid(
        jax.random.normal(k4, (B, NB, n_frames))) * 0.05
    transient_timings = jax.random.uniform(k5, (B, M))                       # [0,1]
    transient_ids = jax.random.randint(k6, (B, M), 0, 4)
    transient_gains = jax.nn.softplus(jax.random.normal(k7, (B, M))) * 0.5
    component_gains = jnp.stack(
        [jnp.full((B, n_frames), 0.7),
         jnp.full((B, n_frames), 0.2),
         jnp.full((B, n_frames), 0.1)], axis=1)                              # (B,3,nf)

    out = ddsp_synthesize(f0, harmonic_amplitudes, harmonic_phase,
                          noise_magnitudes, transient_timings, transient_ids,
                          transient_gains, component_gains, sample_rate=SR)
    out = jax.block_until_ready(out)

    assert out.shape == (B, int(n_frames * SR / 100))
    assert bool(jnp.all(jnp.isfinite(out)))
    print("KERNEL_OK")
</pallas_src>

<mosaic_0001>
module attributes {stable_mosaic.version = 11 : i64} {
  func.func @ddsp_kernel(%arg0: i32, %arg1: i32, %arg2: memref<1x1x40x8xf32, #tpu.memory_space<vmem>>, %arg3: memref<1x8x128xf32, #tpu.memory_space<vmem>>, %arg4: memref<1x1x128xf32, #tpu.memory_space<vmem>>, %arg5: memref<1x1x128xf32, #tpu.memory_space<vmem>>, %arg6: memref<1x1x128xf32, #tpu.memory_space<vmem>>, %arg7: memref<1x1x128xf32, #tpu.memory_space<vmem>>) attributes {dimension_semantics = [#tpu.dimension_semantics<parallel>, #tpu.dimension_semantics<parallel>], iteration_bounds = array<i64: 1, 2>, scalar_prefetch = 0 : i64, scratch_operands = 0 : i64, tpu.core_type = #tpu.core_type<tc>, window_params = [{transform_indices = @transform_0, window_bounds = array<i64: 1, 1, 40, 8>}, {transform_indices = @transform_1, window_bounds = array<i64: 1, 8, 128>}, {transform_indices = @transform_2, window_bounds = array<i64: 1, 1, 128>}, {transform_indices = @transform_3, window_bounds = array<i64: 1, 1, 128>}, {transform_indices = @transform_4, window_bounds = array<i64: 1, 1, 128>}, {transform_indices = @transform_5, window_bounds = array<i64: 1, 1, 128>}]} {
    %c0 = arith.constant 0 : index
    %c0_0 = arith.constant 0 : index
    %c0_1 = arith.constant 0 : index
    %c0_2 = arith.constant 0 : index
    %0 = vector.load %arg2[%c0, %c0_0, %c0_1, %c0_2] : memref<1x1x40x8xf32, #tpu.memory_space<vmem>>, vector<1x1x40x8xf32>
    %1 = vector.shape_cast %0 : vector<1x1x40x8xf32> to vector<40x8xf32>
    %c0_3 = arith.constant 0 : index
    %c0_4 = arith.constant 0 : index
    %c0_5 = arith.constant 0 : index
    %2 = vector.load %arg3[%c0_3, %c0_4, %c0_5] : memref<1x8x128xf32, #tpu.memory_space<vmem>>, vector<1x8x128xf32>
    %3 = vector.shape_cast %2 : vector<1x8x128xf32> to vector<8x128xf32>
    %cst = arith.constant dense<0.000000e+00> : vector<40x128xf32>
    %4 = tpu.matmul %1, %3, %cst {dimension_numbers = #tpu.dot_dimension_numbers<[1], [0], [0], [1], [0, 0, 1, 1], [], []>} : vector<40x8xf32>, vector<8x128xf32>, vector<40x128xf32> -> vector<40x128xf32>
    %5 = vector.extract_strided_slice %4 {offsets = [0, 0], sizes = [1, 128], strides = [1, 1]} : vector<40x128xf32> to vector<1x128xf32>
    %6 = vector.extract_strided_slice %4 {offsets = [1, 0], sizes = [1, 128], strides = [1, 1]} : vector<40x128xf32> to vector<1x128xf32>
    %7 = vector.extract_strided_slice %4 {offsets = [2, 0], sizes = [1, 128], strides = [1, 1]} : vector<40x128xf32> to vector<1x128xf32>
    %8 = vector.extract_strided_slice %4 {offsets = [3, 0], sizes = [1, 128], strides = [1, 1]} : vector<40x128xf32> to vector<1x128xf32>
    %9 = vector.extract_strided_slice %4 {offsets = [4, 0], sizes = [1, 128], strides = [1, 1]} : vector<40x128xf32> to vector<1x128xf32>
    %c0_6 = arith.constant 0 : index
    %c0_7 = arith.constant 0 : index
    %c0_8 = arith.constant 0 : index
    %10 = vector.load %arg4[%c0_6, %c0_7, %c0_8] : memref<1x1x128xf32, #tpu.memory_space<vmem>>, vector<1x1x128xf32>
    %11 = vector.shape_cast %10 : vector<1x1x128xf32> to vector<1x128xf32>
    %12 = tpu.iota {dimensions = array<i32: 0>} : vector<8x128xi32>
    %c1_i32 = arith.constant 1 : i32
    %13 = vector.broadcast %c1_i32 : i32 to vector<8x128xi32>
    %14 = arith.addi %12, %13 : vector<8x128xi32>
    %15 = arith.sitofp %14 : vector<8x128xi32> to vector<8x128xf32>
    %16 = vector.broadcast %11 : vector<1x128xf32> to vector<8x128xf32>
    %17 = arith.mulf %15, %16 : vector<8x128xf32>
    %18 = math.floor %17 : vector<8x128xf32>
    %19 = arith.subf %17, %18 : vector<8x128xf32>
    %cst_9 = arith.constant 6.28318548 : f32
    %20 = vector.broadcast %cst_9 : f32 to vector<8x128xf32>
    %21 = arith.mulf %20, %19 : vector<8x128xf32>
    %22 = math.sin %21 : vector<8x128xf32>
    %23 = math.cos %21 : vector<8x128xf32>
    %24 = vector.extract_strided_slice %22 {offsets = [7, 0], sizes = [1, 128], strides = [1, 1]} : vector<8x128xf32> to vector<1x128xf32>
    %25 = vector.shape_cast %24 : vector<1x128xf32> to vector<1x128xf32>
    %26 = vector.broadcast %25 : vector<1x128xf32> to vector<8x128xf32>
    %27 = vector.extract_strided_slice %23 {offsets = [7, 0], sizes = [1, 128], strides = [1, 1]} : vector<8x128xf32> to vector<1x128xf32>
    %28 = vector.shape_cast %27 : vector<1x128xf32> to vector<1x128xf32>
    %29 = vector.broadcast %28 : vector<1x128xf32> to vector<8x128xf32>
    %cst_10 = arith.constant 9.99999997E-7 : f32
    %30 = vector.broadcast %cst_10 : f32 to vector<1x128xf32>
    %31 = arith.maximumf %5, %30 : vector<1x128xf32>
    %cst_11 = arith.constant 8.000000e+02 : f32
    %32 = vector.broadcast %cst_11 : f32 to vector<1x128xf32>
    %33 = arith.divf %32, %31 : vector<1x128xf32>
    %34 = vector.shape_cast %33 : vector<1x128xf32> to vector<1x128xf32>
    %35 = vector.broadcast %34 : vector<1x128xf32> to vector<8x128xf32>
    %cst_12 = arith.constant 0.000000e+00 : f32
    %36 = vector.broadcast %cst_12 : f32 to vector<8x128xf32>
    %37 = vector.extract_strided_slice %4 {offsets = [8, 0], sizes = [8, 128], strides = [1, 1]} : vector<40x128xf32> to vector<8x128xf32>
    %38 = vector.extract_strided_slice %4 {offsets = [24, 0], sizes = [8, 128], strides = [1, 1]} : vector<40x128xf32> to vector<8x128xf32>
    %39 = arith.mulf %37, %22 : vector<8x128xf32>
    %40 = arith.mulf %38, %23 : vector<8x128xf32>
    %41 = arith.addf %39, %40 : vector<8x128xf32>
    %cst_13 = arith.constant 0.000000e+00 : f32
    %42 = vector.broadcast %cst_13 : f32 to vector<8x128xf32>
    %43 = arith.addf %15, %42 : vector<8x128xf32>
    %44 = arith.cmpf olt, %43, %35 : vector<8x128xf32>
    %cst_14 = arith.constant 0.000000e+00 : f32
    %45 = vector.broadcast %cst_14 : f32 to vector<8x128xf32>
    %46 = arith.select %44, %41, %45 : vector<8x128xi1>, vector<8x128xf32>
    %47 = arith.addf %36, %46 : vector<8x128xf32>
    %48 = arith.mulf %22, %29 : vector<8x128xf32>
    %49 = arith.mulf %23, %26 : vector<8x128xf32>
    %50 = arith.addf %48, %49 : vector<8x128xf32>
    %51 = arith.mulf %23, %29 : vector<8x128xf32>
    %52 = arith.mulf %22, %26 : vector<8x128xf32>
    %53 = arith.subf %51, %52 : vector<8x128xf32>
    %54 = vector.extract_strided_slice %4 {offsets = [16, 0], sizes = [8, 128], strides = [1, 1]} : vector<40x128xf32> to vector<8x128xf32>
    %55 = vector.extract_strided_slice %4 {offsets = [32, 0], sizes = [8, 128], strides = [1, 1]} : vector<40x128xf32> to vector<8x128xf32>
    %56 = arith.mulf %54, %50 : vector<8x128xf32>
    %57 = arith.mulf %55, %53 : vector<8x128xf32>
    %58 = arith.addf %56, %57 : vector<8x128xf32>
    %cst_15 = arith.constant 8.000000e+00 : f32
    %59 = vector.broadcast %cst_15 : f32 to vector<8x128xf32>
    %60 = arith.addf %15, %59 : vector<8x128xf32>
    %61 = arith.cmpf olt, %60, %35 : vector<8x128xf32>
    %cst_16 = arith.constant 0.000000e+00 : f32
    %62 = vector.broadcast %cst_16 : f32 to vector<8x128xf32>
    %63 = arith.select %61, %58, %62 : vector<8x128xi1>, vector<8x128xf32>
    %64 = arith.addf %47, %63 : vector<8x128xf32>
    %cst_17 = arith.constant dense<0.000000e+00> : vector<128xf32>
    %65 = vector.multi_reduction <add>, %64, %cst_17 [0] : vector<8x128xf32> to vector<128xf32>
    %66 = vector.shape_cast %65 : vector<128xf32> to vector<1x128xf32>
    %c0_18 = arith.constant 0 : index
    %c0_19 = arith.constant 0 : index
    %c0_20 = arith.constant 0 : index
    %67 = vector.load %arg5[%c0_18, %c0_19, %c0_20] : memref<1x1x128xf32, #tpu.memory_space<vmem>>, vector<1x1x128xf32>
    %68 = vector.shape_cast %67 : vector<1x1x128xf32> to vector<1x128xf32>
    %69 = arith.mulf %68, %6 : vector<1x128xf32>
    %70 = arith.mulf %66, %7 : vector<1x128xf32>
    %71 = arith.mulf %69, %8 : vector<1x128xf32>
    %72 = arith.addf %70, %71 : vector<1x128xf32>
    %c0_21 = arith.constant 0 : index
    %c0_22 = arith.constant 0 : index
    %c0_23 = arith.constant 0 : index
    %73 = vector.load %arg6[%c0_21, %c0_22, %c0_23] : memref<1x1x128xf32, #tpu.memory_space<vmem>>, vector<1x1x128xf32>
    %74 = vector.shape_cast %73 : vector<1x1x128xf32> to vector<1x128xf32>
    %75 = arith.mulf %74, %9 : vector<1x128xf32>
    %76 = arith.addf %72, %75 : vector<1x128xf32>
    %c0_24 = arith.constant 0 : index
    %c0_25 = arith.constant 0 : index
    %c0_26 = arith.constant 0 : index
    %77 = vector.load %arg7[%c0_24, %c0_25, %c0_26] : memref<1x1x128xf32, #tpu.memory_space<vmem>>, vector<1x1x128xf32>
    %78 = vector.shape_cast %77 : vector<1x1x128xf32> to vector<1x128xf32>
    %79 = vector.shape_cast %76 : vector<1x128xf32> to vector<1x1x128xf32>
    tpu.vector_store %arg7[%c0_24, %c0_25, %c0_26], %79 {strides = array<i32>} : memref<1x1x128xf32, #tpu.memory_space<vmem>>, vector<1x1x128xf32>,
    return
  }
  func.func @transform_0(%arg0: i32, %arg1: i32) -> (i32, i32, i32, i32) {
    %c0_i32 = arith.constant 0 : i32
    %c0_i32_0 = arith.constant 0 : i32
    %c0_i32_1 = arith.constant 0 : i32
    return %arg1, %arg0, %c0_i32, %c0_i32_0 : i32, i32, i32, i32
  }
  func.func @transform_1(%arg0: i32, %arg1: i32) -> (i32, i32, i32) {
    %c0_i32 = arith.constant 0 : i32
    %c0_i32_0 = arith.constant 0 : i32
    %c0_i32_1 = arith.constant 0 : i32
    return %arg0, %c0_i32, %c0_i32_0 : i32, i32, i32
  }
  func.func @transform_2(%arg0: i32, %arg1: i32) -> (i32, i32, i32) {
    %c0_i32 = arith.constant 0 : i32
    %c0_i32_0 = arith.constant 0 : i32
    return %arg1, %c0_i32, %arg0 : i32, i32, i32
  }
  func.func @transform_3(%arg0: i32, %arg1: i32) -> (i32, i32, i32) {
    %c0_i32 = arith.constant 0 : i32
    %c0_i32_0 = arith.constant 0 : i32
    return %arg1, %c0_i32, %arg0 : i32, i32, i32
  }
  func.func @transform_4(%arg0: i32, %arg1: i32) -> (i32, i32, i32) {
    %c0_i32 = arith.constant 0 : i32
    %c0_i32_0 = arith.constant 0 : i32
    return %arg1, %c0_i32, %arg0 : i32, i32, i32
  }
  func.func @transform_5(%arg0: i32, %arg1: i32) -> (i32, i32, i32) {
    %c0_i32 = arith.constant 0 : i32
    %c0_i32_0 = arith.constant 0 : i32
    return %arg1, %c0_i32, %arg0 : i32, i32, i32
  }
}

</mosaic_0001>

<bundles_post_ra>
// kernel: tpu_custom_call.1
= control target key start
LH: loop header
LB: loop body
LE: loop exit
PB: predicated region body
PF: predicated region fallthrough
CT: control target
= control target key end

     0   :  { %10 = vsyncpa [#allocation3], 0  ;;  %s1323_s0 = inlined_call_operand.vmem [shape: f32[2,1,40,8], index: 0, kind: input, shape index: {}]   ;;  %s1324_s1 = inlined_call_operand.vmem [shape: f32[1,8,128], index: 1, kind: input, shape index: {}]   ;;  %s1325_s2 = inlined_call_operand.vmem [shape: f32[2,1,128], index: 2, kind: input, shape index: {}]   ;;  %s1326_s3 = inlined_call_operand.vmem [shape: f32[2,1,128], index: 3, kind: input, shape index: {}]   ;;  %s1327_s4 = inlined_call_operand.vmem [shape: f32[2,1,128], index: 4, kind: input, shape index: {}]   ;;  %s1328_s5 = inlined_call_operand.hbm [shape: f32[2,1,128], index: 5, kind: output, shape index: {}]  }
   0x1   :  { %12 = vsyncpa [#allocation3 + $0x1], 0  ;;  %s1134_s18 = smov 0   ;;  %s1136_s19 = smov 0  }
   0x2   :  { %s1138_s20 = smov 0   ;;  %s1140_s21 = smov 0  }
   0x3   :  { %s1142_s22 = smov 0   ;;  %s1144_s23 = smov 0  }
   0x4 LB: > { %s928_s24 = sadd.s32 4294967295, %s1095_s23   ;;  %s929_s25 = sadd.s32 4294967294, %s1095_s23   ;;  %s1095_s23 = sphi %s1144_s23, %s18_s23   ;;  %s1091_s22 = sphi %s1142_s22, %s1337_s22   ;;  %s1087_s21 = sphi %s1140_s21, %s1336_s21   ;;  %s1083_s20 = sphi %s1138_s20, %s1335_s20   ;;  %s1079_s19 = sphi %s1136_s19, %s1334_s19   ;;  %s1075_s18 = sphi %s1134_s18, %s1333_s18  }
   0x5   : > { %s27_s26 = sadd.s32 1, %s1091_s22  ;;  %s177_s27 = sadd.s32 1, %s1083_s20 }
   0x6   : > { %p28_p0 = scmp.ge.s32.totalorder %s27_s26, 2  ;;  %p187_p1 = scmp.ne.s32.totalorder %s1083_s20, %s1079_s19 }
   0x7   : > { %p188_p2 = scmp.eq.s32.totalorder %s928_s24, 1  ;;  %p193_p3 = scmp.ne.s32.totalorder %s1079_s19, %s1075_s18 }
   0x8   : > { %s1339_s26 = smov (%p28_p0, %s27_s26), 0  ;;  %p194_p5 = scmp.eq.s32.totalorder %s929_s25, 1 }
   0x9   : > { %p1174_p4 = por %p188_p2, %p187_p1  ;;  %s172_s29 = ssub.s32 %s1091_s22, %s1339_s26 }
   0xa   : > { %p933_p6 = scmp.ge.s32.totalorder %s1095_s23, 1  ;;  %p175_p7 = scmp.eq.s32.totalorder %s172_s29, 0 }
   0xb   : > { %p1181_p8 = por %p194_p5, %p193_p3  ;;  %p258_p9 = scmp.lt.s32.totalorder %s1095_s23, 3 }
   0xc   : > { %s1187_s6 = scalar_select %p175_p7, %s1083_s20, %s177_s27  }
   0xd   : > { %p259_p10 = pnand %p933_p6, %p258_p9 }
   0xe   : > { %p311_p11 = scmp.lt.s32.totalorder (!%p259_p10), %s1087_s21, 1  ;;  %s309_s8 = sand.u32 (!%p259_p10), 1, %s1079_s19  }
   0xf   : > { %262 = sbr.rel (%p259_p10) target bundleno = 200 (0xc8), region = 40  ;;  %s800_s12 = scalar_lea.hbm (!%p259_p10), %s1328_s5, %s1087_s21 }
  0x10   : > { %s791_s15 = scalar_lea.sflag (!%p259_p10), [#allocation3], %s309_s8 }
  0x14   : > { %v347_v0 = vld [vmem:[%s1324_s1] sm:$0xff]  ;;  %v397_v1 = vlaneseq  ;;  %s1194_s9 = scalar_select %p311_p11, %s1087_s21, 1  ;;  %vm348_vm0 = vcmask 64512   ;;  %v1097_v25 = vmov 683565275  }
  0x15   : > { %379 = vmatpush.msra.mxu0 %v347_v0  ;;  %949 = vmatpush.msra.mxu2 %v347_v0  ;;  %v1098_v27 = vmov 2475754826   ;;  %v1099_v29 = vmov 2131351028   ;;  %v1100_v32 = vmov 2102212464  }
  0x16   : > { %950 = vmatpush.msra.mxu3 %v347_v0  ;;  %948 = vmatpush.msra.mxu1 %v347_v0  ;;  %v398_v2 = vshrl.u32 %v397_v1, 7  ;;  %s951_s10 = smul.u32 40, %s1194_s9  ;;  %s329_s13 = scalar_lea.vmem %s1325_s2, %s1194_s9  ;;  %v1101_v37 = vmov 920167782   ;;  %v1102_v40 = vmov 1326507024  }
  0x17   : > { %v1014_v4 = vld [vmem:[%s329_s13] ss:$0 sm:$0xff]  ;;  %s335_s25 = scalar_lea.vmem %s1326_s3, %s1194_s9  ;;  %s341_s7 = scalar_lea.vmem %s1327_s4, %s1194_s9 }
  0x18   : > { %v399_v3 = vadd.s32 1, %v398_v2  ;;  %s319_s16 = scalar_lea.vmem %s1323_s0, %s951_s10  ;;  %s310_s13 = scalar_lea.vmem [#allocation2], %s309_s8 }
  0x19   : > { %v342_v6 = vld [vmem:[%s319_s16] sm:$0xff]  ;;  %v344_v7 = vld [vmem:[%s319_s16 + $0x10] sm:$0xff]  ;;  %v343_v9 = vld [vmem:[%s319_s16 + $0x8] sm:$0xff]  ;;  %s802_s14 = sshll.u32 %s310_s13, 4  ;;  %s804_s9 = sshll.u32 %s800_s12, 4  ;;  %s803_s14 = int_to_ptr.vmem [resolvable:$true] %s802_s14  ;;  %s805_s9 = int_to_ptr.hbm [resolvable:$true] %s804_s9 }
  0x1a   : > { %v1204_v5 = vcvt.s32.f32 %v399_v3  ;;  %v346_v8 = vld [vmem:[%s319_s16 + $0x20] sm:$0xff]  ;;  %935 = vmatmul.msk.f32.vlgmr.msra.gmra.mxu0 %vm348_vm0, %v342_v6  ;;  %937 = vmatmul.msk.f32.vlgmr.msra.gmra.mxu2 %vm348_vm0, %v344_v7  ;;  %v345_v13 = vld [vmem:[%s319_s16 + $0x18] sm:$0xff]  ;;  %s1031_s16 = sshra.s32 %s805_s9, 4  ;;  %s1032_s16 = int_to_ptr.hbm [resolvable:$true] %s1031_s16 }
  0x1b   : > { %939 = vmatmul.msk.f32.vlgmr.msra.gmra.mxu3 %vm348_vm0, %v346_v8  ;;  %936 = vmatmul.msk.f32.vlgmr.msra.gmra.mxu1 %vm348_vm0, %v343_v9  ;;  %s1033_s17 = scalar_lea.hbm %s1032_s16, 1  ;;  %p1038_p1 = scmp.lt.s32.totalorder %s1032_s16, %s1328_s5 }
  0x1c   : > { %v404_v10 = vmul.f32 %v1014_v4, %v1204_v5  ;;  %p1034_p12 = scmp.ne.s32.totalorder %s1032_s16, %s1033_s17 }
  0x1e   : > { %v405_v11 = vfloor.f32 %v404_v10  ;;  %p1035_p13 = pnand %p1034_p12, %p1174_p4 }
  0x20   : > { %v406_v12 = vsub.f32 %v404_v10, %v405_v11  ;;  %p1036_p0 = pneg %p1035_p13 }
  0x22   : > { %v1211_v14 = vmul.f32 6.2831855, %v406_v12  ;;  %938 = vmatmul.msk.f32.gmra.mxu2 %vm348_vm0, %v345_v13  ;;  %v1103_v13 = vmov 0  }
  0x24   : > { %v411_v15 = vand.u32 2139095040, %v1211_v14  ;;  %v408_v19 = vand.u32 2147483647, %v1211_v14  ;;  %vm410_vm13 = vcmp.lt.s32.totalorder %v1211_v14, 0 }
  0x26   : > { %v412_v16 = vshrl.u32 %v411_v15, 23  ;;  %v415_v22 = vand.u32 8388607, %v408_v19  ;;  %vm1259_vm14 = vcmp.le.f32.partialorder %v408_v19, 0.7853982 }
  0x28   : > { %v940_v17 = vadd.s32 4294967169, %v412_v16  ;;  %v416_v31 = vor.u32 8388608, %v415_v22 }
  0x2a   : > { %v418_v18 = vadd.s32 1, %v940_v17  ;;  %v456_v47 = vshll.u32 %v416_v31, 8 }
  0x2c   : > { %vm419_vm1 = vcmp.gt.s32.totalorder %v418_v18, 0  ;;  %v457_v53 = vand.u32 65535, %v456_v47  ;;  %v458_v54 = vshrl.u32 %v456_v47, 16 }
  0x2d   : > { %v420_v20 = vsel %vm419_vm1, %v418_v18, 0 }
  0x2e   : > { %v422_v21 = vand.u32 31, %v420_v20  ;;  %v1218_v23 = vshrl.u32 %v420_v20, 5 }
  0x30   : > { %v1220_v24 = vsub.s32 32, %v422_v21  ;;  %v425_v26 = vshll.u32 %v1097_v25, %v422_v21  ;;  %v428_v28 = vshll.u32 %v1098_v27, %v422_v21  ;;  %v431_v30 = vshll.u32 %v1099_v29, %v422_v21 }
  0x31   : > { %v434_v33 = vshll.u32 %v1100_v32, %v422_v21  ;;  %v437_v39 = vshll.u32 %v1101_v37, %v422_v21  ;;  %vm440_vm2 = vcmp.lt.s32.totalorder %v1218_v23, 1  ;;  %vm441_vm3 = vcmp.lt.s32.totalorder %v1218_v23, 2 }
  0x32   : > { %v426_v34 = vshrl.u32 %v1098_v27, %v1220_v24  ;;  %v429_v35 = vshrl.u32 %v1099_v29, %v1220_v24  ;;  %v432_v36 = vshrl.u32 %v1100_v32, %v1220_v24  ;;  %v435_v38 = vshrl.u32 %v1101_v37, %v1220_v24 }
  0x33   : > { %v438_v41 = vshrl.u32 %v1102_v40, %v1220_v24  ;;  %vm442_vm4 = vcmp.lt.s32.totalorder %v1218_v23, 3  ;;  %vm443_vm5 = vcmp.lt.s32.totalorder %v1218_v23, 4  ;;  %v424_v18 = vshrl.u32 %v1097_v25, %v1220_v24 }
  0x34   : > { %v427_v42 = vor.u32 %v426_v34, %v425_v26  ;;  %v430_v43 = vor.u32 %v429_v35, %v428_v28  ;;  %v433_v44 = vor.u32 %v432_v36, %v431_v30  ;;  %v436_v45 = vor.u32 %v435_v38, %v434_v33 }
  0x35   : > { %v439_v46 = vor.u32 %v438_v41, %v437_v39 }
  0x36   : > { %v448_v48 = vsel %vm440_vm2, %v427_v42, %v430_v43  ;;  %v449_v49 = vsel %vm443_vm5, %v436_v45, 920167782  ;;  %v452_v50 = vsel %vm440_vm2, %v430_v43, %v433_v44  ;;  %v445_v22 = vsel %vm443_vm5, %v433_v44, 2102212464 }
  0x37   : > { %v450_v51 = vsel %vm442_vm4, %v433_v44, %v449_v49  ;;  %v453_v52 = vsel %vm443_vm5, %v439_v46, 1326507024  ;;  %v444_v29 = vsel %vm440_vm2, %v424_v18, %v427_v42  ;;  %v446_v30 = vsel %vm442_vm4, %v430_v43, %v445_v22 }
  0x38   : > { %v451_v55 = vsel %vm441_vm3, %v448_v48, %v450_v51  ;;  %v454_v56 = vsel %vm442_vm4, %v436_v45, %v453_v52  ;;  %v447_v35 = vsel %vm441_vm3, %v444_v29, %v446_v30  ;;  %vm551_vm5 = vweird.f32 %v1211_v14 }
  0x39   : > { %v455_v57 = vsel %vm441_vm3, %v452_v50, %v454_v56  ;;  %v481_v58 = vand.u32 65535, %v451_v55  ;;  %v482_v59 = vshrl.u32 %v451_v55, 16  ;;  %v501_v39 = vmul.u32 %v456_v47, %v447_v35 }
  0x3a   : > { %v459_v60 = vand.u32 65535, %v455_v57  ;;  %v460_v61 = vshrl.u32 %v455_v57, 16 }
  0x3b   : > { %v483_v62 = vmul.u32 %v481_v58, %v457_v53  ;;  %v484_v63 = vmul.u32 %v482_v59, %v457_v53  ;;  %v485_v0 = vmul.u32 %v481_v58, %v458_v54  ;;  %v486_v4 = vmul.u32 %v482_v59, %v458_v54 }
  0x3c   : > { %v461_v1 = vmul.u32 %v459_v60, %v457_v53  ;;  %v462_v2 = vmul.u32 %v460_v61, %v457_v53  ;;  %v463_v3 = vmul.u32 %v459_v60, %v458_v54  ;;  %v464_v8 = vmul.u32 %v460_v61, %v458_v54 }
  0x3d   : > { %v487_v6 = vshll.u32 %v484_v63, 16  ;;  %v489_v7 = vshll.u32 %v485_v0, 16  ;;  %v488_v27 = vshrl.u32 %v484_v63, 16  ;;  %v490_v33 = vshrl.u32 %v485_v0, 16 }
  0x3e   : > { %v465_v9 = vshll.u32 %v462_v2, 16  ;;  %v467_v10 = vshll.u32 %v463_v3, 16  ;;  %v466_v20 = vshrl.u32 %v462_v2, 16  ;;  %v468_v31 = vshrl.u32 %v463_v3, 16 }
  0x3f   : > { %vm491_vm6 = vc.u32 %v483_v62, %v487_v6  ;;  %v493_v11 = vadd.s32 %v487_v6, %v483_v62 }
  0x40   : > { %vm469_vm7 = vc.u32 %v461_v1, %v465_v9  ;;  %v471_v12 = vadd.s32 %v465_v9, %v461_v1  ;;  %v492_v15 = vsel %vm491_vm6, 1, %v1103_v13 }
  0x41   : > { %v470_v16 = vsel %vm469_vm7, 1, %v1103_v13  ;;  %v494_v17 = vadd.s32 %v492_v15, %v486_v4  ;;  %vm495_vm8 = vc.u32 %v493_v11, %v489_v7  ;;  %v497_v25 = vadd.s32 %v493_v11, %v489_v7 }
  0x42   : > { %v472_v21 = vadd.s32 %v470_v16, %v464_v8  ;;  %vm473_vm9 = vc.u32 %v471_v12, %v467_v10  ;;  %v496_v28 = vsel %vm495_vm8, 1, %v1103_v13 }
  0x43   : > { %v474_v26 = vsel %vm473_vm9, 1, %v1103_v13  ;;  %v498_v34 = vadd.s32 %v496_v28, %v494_v17 }
  0x44   : > { %v476_v32 = vadd.s32 %v474_v26, %v472_v21 }
  0x45   : > { %v499_v36 = vadd.s32 %v498_v34, %v488_v27 }
  0x46   : > { %v477_v24 = vadd.s32 %v476_v32, %v466_v20 }
  0x47   : > { %v500_v38 = vadd.s32 %v499_v36, %v490_v33 }
  0x48   : > { %v478_v37 = vadd.s32 %v477_v24, %v468_v31 }
  0x49   : > { %v504_v40 = vadd.s32 1, %v500_v38 }
  0x4a   : > { %vm503_vm10 = vc.u32 %v478_v37, %v497_v25  ;;  %v502_v52 = vadd.s32 %v497_v25, %v478_v37 }
  0x4b   : > { %v505_v41 = vsel %vm503_vm10, %v504_v40, %v500_v38 }
  0x4c   : > { %v506_v42 = vadd.s32 %v505_v41, %v501_v39 }
  0x4e   : > { %v507_v44 = vadd.s32 536870912, %v506_v42 }
  0x50   : > { %v508_v45 = vshrl.u32 %v507_v44, 30 }
  0x52   : > { %v509_v43 = vshll.u32 %v508_v45, 30  ;;  %v532_v10 = vsub.s32 4, %v508_v45 }
  0x54   : > { %v510_v46 = vsub.s32 %v506_v42, %v509_v43  ;;  %v533_v13 = vsel %vm410_vm13, %v532_v10, %v508_v45 }
  0x55   : > { %v535_v16 = vsel %vm1259_vm14, 0, %v533_v13 }
  0x56   : > { %vm511_vm11 = vcmp.lt.s32.totalorder %v510_v46, 0  ;;  %v512_v48 = vsub.s32 0, %v510_v46  ;;  %v552_v20 = vadd.s32 3, %v535_v16  ;;  %v707_v27 = vand.u32 3, %v535_v16 }
  0x58   : > { %v513_v49 = vsel %vm511_vm11, %v512_v48, %v510_v46  ;;  %v553_v26 = vand.u32 3, %v552_v20  ;;  %vm709_vm1 = vcmp.eq.s32.totalorder %v707_v27, 0  ;;  %vm712_vm2 = vcmp.eq.s32.totalorder %v707_v27, 2 }
  0x59   : > { %v514_v50 = vclz %v513_v49  ;;  %vm708_vm4 = vcmp.lt.s32.totalorder %v707_v27, 2 }
  0x5a   : > { %vm555_vm15 = vcmp.eq.s32.totalorder %v553_v26, 0  ;;  %vm558_vm0 = vcmp.eq.s32.totalorder %v553_v26, 2  ;;  %vm554_vm3 = vcmp.lt.s32.totalorder %v553_v26, 2 }
  0x5b   : > { %v941_v51 = vadd.s32 4294967294, %v514_v50 }
  0x5d   : > { %vm942_vm12 = vcmp.lt.s32.totalorder %v941_v51, 0 }
  0x5e   : > { %v517_v23 = vsel %vm942_vm12, 0, %v941_v51 }
  0x5f   : > { %v518_v53 = vsub.s32 32, %v517_v23  ;;  %v519_v54 = vshll.u32 %v510_v46, %v517_v23  ;;  %v522_v55 = vsub.s32 4294967266, %v517_v23 }
  0x61   : > { %v520_v47 = vshrl.u32 %v502_v52, %v518_v53  ;;  %v523_v56 = vadd.s32 127, %v522_v55 }
  0x63   : > { %v521_v57 = vor.u32 %v520_v47, %v519_v54  ;;  %v524_v58 = vshll.u32 %v523_v56, 23 }
  0x65   : > { %v525_v59 = vor.u32 4788187, %v524_v58  ;;  %v528_v60 = vcvt.s32.f32 %v521_v57 }
  0x67   : > { %v526_v61 = vand.u32 2147483647, %v525_v59 }
  0x69   : > { %v529_v62 = vmul.f32 %v528_v60, %v526_v61 }
  0x6b   : > { %v530_v0 = vxor.u32 2147483648, %v529_v62 }
  0x6d   : > { %v531_v1 = vsel %vm410_vm13, %v530_v0, %v529_v62 }
  0x6e   : > { %v534_v2 = vsel %vm1259_vm14, %v1211_v14, %v531_v1  ;;  %v752_v1 = vadd.f32 8.0, %v1204_v5 }
  0x6f   : > { %v536_v3 = vmul.f32 %v534_v2, %v534_v2 }
  0x71   : > { %v544_v4 = vmul.f32 -0.00019511016, %v536_v3  ;;  %v537_v6 = vmul.f32 -0.001358992, %v536_v3 }
  0x73   : > { %v545_v7 = vadd.f32 0.008332121, %v544_v4  ;;  %v538_v8 = vadd.f32 0.041655596, %v537_v6 }
  0x75   : > { %v546_v9 = vmul.f32 %v545_v7, %v536_v3  ;;  %v539_v11 = vmul.f32 %v538_v8, %v536_v3 }
  0x77   : > { %v547_v12 = vadd.f32 -0.16666654, %v546_v9  ;;  %v540_v19 = vadd.f32 -0.4999988, %v539_v11  ;;  %v762_v11 = vld [vmem:[%s335_s25] sm:$0x1] }
  0x78   : > { %s1037_s25 = scalar_lea.hbm %s1328_s5, 2 }
  0x79   : > { %v548_v15 = vmul.f32 %v547_v12, %v536_v3  ;;  %v541_v17 = vmul.f32 %v540_v19, %v536_v3  ;;  %p1039_p2 = scmp.lt.s32.totalorder %s1037_s25, %s1033_s17 }
  0x7b   : > { %v549_v18 = vadd.f32 1.0, %v548_v15  ;;  %v542_v21 = vadd.f32 1.0, %v541_v17  ;;  %p1040_p3 = por %p1039_p2, %p1038_p1 }
  0x7d   : > { %v550_v22 = vmul.f32 %v549_v18, %v534_v2  ;;  %v559_v29 = vxor.u32 2147483648, %v542_v21  ;;  %p1041_p5 = pnand %p1040_p3, %p1036_p0 }
  0x7f   : > { %v556_v28 = vxor.u32 2147483648, %v550_v22  ;;  %v560_v31 = vsel %vm558_vm0, %v559_v29, %v550_v22  ;;  %v714_v33 = vsel %vm712_vm2, %v559_v29, %v550_v22 }
  0x81   : > { %v557_v30 = vsel %vm555_vm15, %v542_v21, %v556_v28  ;;  %v711_v32 = vsel %vm709_vm1, %v542_v21, %v556_v28 }
  0x82   : > { %v561_v25 = vsel %vm554_vm3, %v557_v30, %v560_v31  ;;  %v715_v35 = vsel %vm708_vm4, %v711_v32, %v714_v33 }
  0x83   : > { %v562_v36 = vsel %vm551_vm5, nan, %v561_v25  ;;  %v716_v37 = vsel %vm551_vm5, nan, %v715_v35 }
  0x84   : > { %v717_v39 = vperm.slane %v562_v36, 7  ;;  %v718_v40 = vperm.slane %v716_v37, 7 }
  0x86   : > { %v743_v45 = vmul.f32 %v718_v40, %v562_v36  ;;  %v744_v43 = vmul.f32 %v717_v39, %v716_v37  ;;  %v746_v46 = vmul.f32 %v718_v40, %v716_v37  ;;  %v747_v48 = vmul.f32 %v717_v39, %v562_v36 }
  0x88   : > { %v745_v53 = vadd.f32 %v744_v43, %v743_v45  ;;  %v748_v54 = vsub.f32 %v746_v46, %v747_v48 }
  0x97   : > { %v1268_v34 = vpop.f32.mrf.mxu0 }
  0x98   : > { %v719_v24 = vmax.f32 %v1268_v34, 1e-06  ;;  %764 = vst [vmem:[#allocation1] sm:$0xff] %v1268_v34  ;;  %v384_v52 = vpop.f32.mrf.mxu1 }
  0x99   : > { %v736_v58 = vmul.f32 %v562_v36, %v384_v52 }
  0x9a   : > { %1015 = vrcp.f32 %v719_v24  ;;  %v731_v50 = vand.u32 2147483648, %v719_v24  ;;  %v729_v51 = vand.u32 2147483647, %v719_v24  ;;  %vm725_vm7 = vweird.f32 %v719_v24 }
  0x9c   : > { %v732_v57 = vor.u32 1.1754944e-38, %v731_v50  ;;  %vm730_vm9 = vcmp.eq.f32.partialorder %v729_v51, 8.507059e+37 }
  0x9d   : > { %v387_v38 = vpop.f32.mrf.mxu2 }
  0x9e   : > { %v393_v47 = vpop.f32.mrf.mxu3  ;;  %v749_v61 = vmul.f32 %v745_v53, %v387_v38 }
  0x9f   : > { %v766_v41 = vld [vmem:[#allocation1 + $0x1] ss:$9 sm:$0xff]  ;;  %v750_v63 = vmul.f32 %v748_v54, %v393_v47 }
  0xa0   : > { %v1016_v42 = vpop.eup %1015  ;;  %770 = vst [vmem:[#allocation1] sm:$0xff] %v1268_v34  ;;  %v768_v13 = vmul.f32 %v766_v41, %v762_v11 }
  0xa1   : > { %v721_v44 = vmul.f32 %v1016_v42, %v719_v24  ;;  %vm726_vm6 = vweird.f32 %v1016_v42  ;;  %v751_v4 = vadd.f32 %v750_v63, %v749_v61 }
  0xa2   : > { %vm727_vm8 = vmor %vm725_vm7, %vm726_vm6 }
  0xa3   : > { %v722_v49 = vsub.f32 1.0, %v721_v44 }
  0xa5   : > { %v723_v14 = vmul.f32 %v1016_v42, %v722_v49  ;;  %v390_v23 = vpop.f32.mrf.mxu2 }
  0xa6   : > { %v737_v59 = vmul.f32 %v716_v37, %v390_v23 }
  0xa7   : > { %v772_v55 = vld [vmem:[#allocation1 + $0x3] ss:$9 sm:$0xff]  ;;  %v724_v56 = vadd.f32 %v1016_v42, %v723_v14 }
  0xa8   : > { %780 = vst [vmem:[#allocation1] sm:$0xff] %v1268_v34  ;;  %v738_v2 = vadd.f32 %v737_v59, %v736_v58  ;;  %v774_v17 = vmul.f32 %v772_v55, %v768_v13 }
  0xa9   : > { %v728_v60 = vsel %vm727_vm8, %v1016_v42, %v724_v56 }
  0xaa   : > { %v733_v62 = vsel %vm730_vm9, %v732_v57, %v728_v60  ;;  %v776_v22 = vperm.slane %v774_v17, 0 }
  0xab   : > { %v734_v0 = vmul.f32 800.0, %v733_v62 }
  0xad   : > { %v735_v3 = vperm.slane %v734_v0, 0 }
  0xaf   : > { %vm753_vm10 = vcmp.lt.f32.partialorder %v752_v1, %v735_v3  ;;  %vm740_vm11 = vcmp.lt.f32.partialorder %v1204_v5, %v735_v3  ;;  %v779_v5 = vld [vmem:[%s341_s7] sm:$0x1]  ;;  %v782_v15 = vld [vmem:[#allocation1 + $0x4] ss:$9 sm:$0xff] }
  0xb0   : > { %v754_v6 = vsel %vm753_vm10, %v751_v4, 0.0  ;;  %v741_v7 = vsel %vm740_vm11, %v738_v2, 0.0  ;;  %v784_v20 = vmul.f32 %v782_v15, %v779_v5 }
  0xb1   : > { %v755_v8 = vadd.f32 %v754_v6, %v741_v7 }
  0xb2   : > { %v786_v27 = vperm.slane %v784_v20, 0 }
  0xb3   : > { %v756_v9 = vrot.slane %v755_v8, 4 }
  0xb5   : > { %v757_v10 = vadd.f32 %v756_v9, %v755_v8 }
  0xb7   : > { %v758_v12 = vrot.slane %v757_v10, 2 }
  0xb9   : > { %v759_v19 = vadd.f32 %v758_v12, %v757_v10 }
  0xbb   : > { %v760_v16 = vrot.slane %v759_v19, 1 }
  0xbd   : > { %v761_v18 = vadd.f32 %v760_v16, %v759_v19 }
  0xbf   : > { %v769_v21 = vmul.f32 %v761_v18, %v1268_v34 }
  0xc1   : > { %v778_v26 = vadd.f32 %v776_v22, %v769_v21 }
  0xc3   : > { %v788_v28 = vadd.f32 %v786_v27, %v778_v26 }
  0xc5   : > { %789 = vst [vmem:[%s310_s13 - $0x2] sm:$0x4] %v788_v28 }
  0xc6   : > { %1044 = shalt.err (!%p1041_p5)
}
  0xc7   : > { %952 = dma.vmem_to_hbm [thread:$0]  (%p1174_p4), %s803_s14, 16, %s805_s9, %s791_s15  }
  0xc8 PF: > { %p958_p6 = scmp.ge.s32.totalorder %s1095_s23, 2  ;;  %s816_s7 = sand.u32 1, %s1075_s18  }
  0xc9   : > { %s817_s8 = scalar_lea.sflag [#allocation3], %s816_s7 }
  0xca   : > { %p955_p7 = pnand %p958_p6, %p1181_p8 }
  0xcc   : > { %p956_p9 = pneg %p955_p7 }
  0xce   : > { %1070 = dma.done.wait (%p956_p9), %s817_s8, 16  }
  0xcf   : > { %1072 = vsyncadd (%p956_p9), %s817_s8, 4294967280  ;;  %s18_s23 = sadd.s32 1, %s1095_s23   ;;  %s1333_s18 = smov %s1079_s19 }
  0xd0   : > { %p15_p10 = scmp.ge.s32.totalorder %s18_s23, 4   ;;  %s1334_s19 = smov %s1083_s20 }
  0xd1   : > { %s1335_s20 = smov %s1187_s6  ;;  %s1336_s21 = smov %s1091_s22 }
  0xd2   : > { %s1337_s22 = smov %s1339_s26  ;;  %17 = sbr.rel (!%p15_p10) target bundleno = 4 (0x4), region = 90 }
  0xd7   :  { %822 = vsyncpa [#allocation3], 1 }
  0xd8   :  { %824 = vsyncpa [#allocation3 + $0x1], 1 }

</bundles_post_ra>
